<compile_context>
chip_gen: v7x
topology: tpu7x:2x2x1
jax: 0.10.0
libtpu: 0.0.40
codegen_flags: <defaults>
</compile_context>

<pallas_src>
import jax
import jax.numpy as jnp
from jax.experimental import pallas as pl
from jax.experimental.pallas import tpu as pltpu


# ----------------------------------------------------------------------------
# Kernel body: one lane-dense tile  o = W @ x_tile  on the MXU.
# ----------------------------------------------------------------------------
def _combiner_kernel(w_ref, x_ref, o_ref):
    # w_ref: (new_C, C)   x_ref: (C, TILE_L)   o_ref: (new_C, TILE_L)
    o_ref[...] = jnp.dot(
        w_ref[...],
        x_ref[...],
        preferred_element_type=jnp.float32,
        precision=jax.lax.Precision.HIGHEST,  # f32 parity with torch matmul
    ).astype(o_ref.dtype)


# ----------------------------------------------------------------------------
# Tiling helpers.
# ----------------------------------------------------------------------------
_LANE = 128
_MAX_LANE_TILE = 2048          # long contiguous DMA rows, few grid steps
_TILE_VMEM_BUDGET = 24 << 20   # double-buffered in+out tiles; safe even on v7x (64 MiB)


def _pick_lane_tile(c, new_c, lane_extent):
    """Largest lane tile (multiple of 128) whose double-buffered footprint fits."""
    per_lane_bytes = 2 * 4 * (c + new_c)          # 2x double-buffered f32 in + out
    max_by_vmem = _TILE_VMEM_BUDGET // per_lane_bytes
    max_by_vmem = max((max_by_vmem // _LANE) * _LANE, _LANE)
    tile = min(_MAX_LANE_TILE, max_by_vmem)
    if lane_extent <= tile:
        return lane_extent                        # full-extent block is always legal
    return tile                                   # multiple of 128


def _vmem_limit_bytes(c, new_c, lane_tile):
    needed = 4 * (2 * (c + new_c) * lane_tile + 2 * new_c * c) + (4 << 20)
    return int(max(32 << 20, min(needed, 48 << 20)))


def _cost_estimate(b, c, new_c, t):
    return pl.CostEstimate(
        flops=2 * b * new_c * c * t,
        transcendentals=0,
        bytes_accessed=4 * (b * c * t + b * new_c * t + new_c * c),
    )


# ----------------------------------------------------------------------------
# Path A: T is lane-dense already (multiple of 128) -> grid over (B, T tiles).
# ----------------------------------------------------------------------------
def _combine_tiled_time(weight, x, tile_t):
    new_c, c = weight.shape
    b, _, t = x.shape
    grid_t = pl.cdiv(t, tile_t)
    return pl.pallas_call(
        _combiner_kernel,
        out_shape=jax.ShapeDtypeStruct((b, new_c, t), x.dtype),
        grid_spec=pltpu.PrefetchScalarGridSpec(
            num_scalar_prefetch=0,
            grid=(b, grid_t),
            in_specs=[
                # Weight: constant block index -> DMA'd once, VMEM-resident.
                pl.BlockSpec((new_c, c), lambda i, j: (0, 0)),
                # x: one (C, TILE_T) lane-dense tile per step (batch squeezed).
                pl.BlockSpec((None, c, tile_t), lambda i, j: (i, 0, j)),
            ],
            out_specs=pl.BlockSpec((None, new_c, tile_t), lambda i, j: (i, 0, j)),
        ),
        compiler_params=pltpu.CompilerParams(
            dimension_semantics=("parallel", "parallel"),
            vmem_limit_bytes=_vmem_limit_bytes(c, new_c, tile_t),
        ),
        cost_estimate=_cost_estimate(b, c, new_c, t),
    )(weight, x)


# ----------------------------------------------------------------------------
# Path B: small / non-128-multiple T -> fold batch into the lane axis.
# ----------------------------------------------------------------------------
def _combine_folded_batch(weight, x, tile_l):
    new_c, c = weight.shape
    b, _, t = x.shape
    lanes = b * t
    # Present x as a single lane-dense (C, B*T) slab (layout plumbing only).
    x2 = jnp.transpose(x, (1, 0, 2)).reshape(c, lanes)
    grid_l = pl.cdiv(lanes, tile_l)
    out2 = pl.pallas_call(
        _combiner_kernel,
        out_shape=jax.ShapeDtypeStruct((new_c, lanes), x.dtype),
        grid_spec=pltpu.PrefetchScalarGridSpec(
            num_scalar_prefetch=0,
            grid=(grid_l,),
            in_specs=[
                pl.BlockSpec((new_c, c), lambda j: (0, 0)),
                pl.BlockSpec((c, tile_l), lambda j: (0, j)),
            ],
            out_specs=pl.BlockSpec((new_c, tile_l), lambda j: (0, j)),
        ),
        compiler_params=pltpu.CompilerParams(
            dimension_semantics=("parallel",),
            vmem_limit_bytes=_vmem_limit_bytes(c, new_c, tile_l),
        ),
        cost_estimate=_cost_estimate(b, c, new_c, t),
    )(weight, x2)
    return jnp.transpose(out2.reshape(new_c, b, t), (1, 0, 2))


# ----------------------------------------------------------------------------
# Public wrapper (matches LinearChannelCombiner.forward).
# ----------------------------------------------------------------------------
def linear_channel_combiner(weight, x):
    """weight: (new_C, C) f32, x: (B, C, T) f32 -> (B, new_C, T)."""
    new_c, c = weight.shape
    b, c2, t = x.shape
    assert c == c2, "channel mismatch"

    if t % _LANE == 0:
        tile_t = _pick_lane_tile(c, new_c, t)
        return _combine_tiled_time(weight, x, tile_t)
    tile_l = _pick_lane_tile(c, new_c, b * t)
    return _combine_folded_batch(weight, x, tile_l)


if __name__ == "__main__":
    key = jax.random.PRNGKey(0)
    k_w, k_x, k_x2 = jax.random.split(key, 3)

    # Small shapes consistent with the module (multivariate time series).
    B, C, NEW_C, T = 2, 4, 3, 16

    # torch.rand -> uniform [0, 1); deterministic synthetic init.
    reduction_matrix = jax.random.uniform(
        k_w, (NEW_C, C), dtype=jnp.float32, minval=0.0, maxval=1.0
    )
    x = jax.random.normal(k_x, (B, C, T), dtype=jnp.float32)

    out = jax.block_until_ready(linear_channel_combiner(reduction_matrix, x))
    ref = jnp.einsum("nc,bct->bnt", reduction_matrix, x)
    assert out.shape == (B, NEW_C, T), out.shape
    assert jnp.allclose(out, ref, atol=1e-5, rtol=1e-5), "mismatch (folded-batch path)"

    # Also exercise the lane-tiled path (T multiple of 128).
    T2 = 256
    x_big = jax.random.normal(k_x2, (B, C, T2), dtype=jnp.float32)
    out_big = jax.block_until_ready(linear_channel_combiner(reduction_matrix, x_big))
    ref_big = jnp.einsum("nc,bct->bnt", reduction_matrix, x_big)
    assert out_big.shape == (B, NEW_C, T2), out_big.shape
    assert jnp.allclose(out_big, ref_big, atol=1e-5, rtol=1e-5), "mismatch (tiled-T path)"

    print("KERNEL_OK")
</pallas_src>

<mosaic_0001>
module attributes {stable_mosaic.version = 11 : i64} {
  func.func @_combiner_kernel(%arg0: i32, %arg1: memref<3x4xf32, #tpu.memory_space<vmem>>, %arg2: memref<4x32xf32, #tpu.memory_space<vmem>>, %arg3: memref<3x32xf32, #tpu.memory_space<vmem>>) attributes {dimension_semantics = [#tpu.dimension_semantics<parallel>], iteration_bounds = array<i64: 1>, scalar_prefetch = 0 : i64, scratch_operands = 0 : i64, tpu.core_type = #tpu.core_type<tc>, window_params = [{pipeline_mode = #tpu.pipeline_mode<synchronous>, transform_indices = @transform_0, window_bounds = array<i64: 3, 4>}, {transform_indices = @transform_1, window_bounds = array<i64: 4, 32>}, {transform_indices = @transform_2, window_bounds = array<i64: 3, 32>}]} {
    %c0 = arith.constant 0 : index
    %c0_0 = arith.constant 0 : index
    %0 = vector.load %arg1[%c0, %c0_0] : memref<3x4xf32, #tpu.memory_space<vmem>>, vector<3x4xf32>
    %c0_1 = arith.constant 0 : index
    %c0_2 = arith.constant 0 : index
    %1 = vector.load %arg2[%c0_1, %c0_2] : memref<4x32xf32, #tpu.memory_space<vmem>>, vector<4x32xf32>
    %cst = arith.constant dense<0.000000e+00> : vector<3x32xf32>
    %2 = tpu.matmul %0, %1, %cst {dimension_numbers = #tpu.dot_dimension_numbers<[1], [0], [0], [1], [0, 0, 1, 1], [], []>, precision = #tpu.contract_precision<fp32>} : vector<3x4xf32>, vector<4x32xf32>, vector<3x32xf32> -> vector<3x32xf32>
    %c0_3 = arith.constant 0 : index
    %c0_4 = arith.constant 0 : index
    %3 = vector.load %arg3[%c0_3, %c0_4] : memref<3x32xf32, #tpu.memory_space<vmem>>, vector<3x32xf32>
    tpu.vector_store %arg3[%c0_3, %c0_4], %2 {strides = array<i32>} : memref<3x32xf32, #tpu.memory_space<vmem>>, vector<3x32xf32>,
    return
  }
  func.func @transform_0(%arg0: i32) -> (i32, i32) {
    %c0_i32 = arith.constant 0 : i32
    %c0_i32_0 = arith.constant 0 : i32
    %c0_i32_1 = arith.constant 0 : i32
    return %c0_i32, %c0_i32_0 : i32, i32
  }
  func.func @transform_1(%arg0: i32) -> (i32, i32) {
    %c0_i32 = arith.constant 0 : i32
    %c0_i32_0 = arith.constant 0 : i32
    return %c0_i32, %arg0 : i32, i32
  }
  func.func @transform_2(%arg0: i32) -> (i32, i32) {
    %c0_i32 = arith.constant 0 : i32
    %c0_i32_0 = arith.constant 0 : i32
    return %c0_i32, %arg0 : i32, i32
  }
}

</mosaic_0001>

<bundles_post_ra>
// kernel: tpu_custom_call.1
= control target key start
LH: loop header
LB: loop body
LE: loop exit
PB: predicated region body
PF: predicated region fallthrough
CT: control target
= control target key end

     0   :  { %7 = vsyncpa [#allocation3], 0  ;;  %s700_s0 = inlined_call_operand.hbm [shape: f32[3,4], index: 0, kind: input, shape index: {}]   ;;  %s701_s1 = inlined_call_operand.hbm [shape: f32[4,32], index: 1, kind: input, shape index: {}]   ;;  %s702_s2 = inlined_call_operand.hbm [shape: f32[3,32], index: 2, kind: output, shape index: {}]  }
   0x1   :  { %8 = vsyncpa [#allocation6], 0 }
   0x2   :  { %9 = vsyncpa [#allocation4], 0  ;;  %s638_s9 = smov [#allocation2]   ;;  %s639_s11 = smov [#allocation5]  }
   0x3   :  { %s16_s10 = sshll.u32 %s638_s9, 4  ;;  %s26_s12 = sshll.u32 %s639_s11, 4  ;;  %s17_s10 = int_to_ptr.vmem [resolvable:$true] %s16_s10  ;;  %s27_s12 = int_to_ptr.vmem [resolvable:$true] %s26_s12 }
   0x4   :  { %s566_s15 = scalar_lea.hbm %s700_s0, 64 }
   0x5   :  { %p567_p0 = scmp.ne.s32.totalorder %s700_s0, %s566_s15  ;;  %p570_p1 = scmp.lt.u32.totalorder %s566_s15, %s700_s0 }
   0x7   :  { %p572_p2 = pnand %p570_p1, %p567_p0 }
   0x9   :  { %575 = shalt.err (!%p572_p2)
}
   0xa   :  { %s576_s20 = scalar_lea.vmem %s17_s10, 64  ;;  %p581_p4 = scmp.lt.s32.totalorder %s17_s10, %s17_s10 }
   0xb   :  { %p577_p3 = scmp.ne.s32.totalorder %s17_s10, %s576_s20  ;;  %p582_p5 = scmp.lt.s32.totalorder %s576_s20, %s576_s20 }
   0xd   :  { %p583_p6 = por %p582_p5, %p581_p4 }
   0xf   :  { %p584_p7 = pnand %p583_p6, %p577_p3 }
  0x11   :  { %587 = shalt.err (!%p584_p7)
}
  0x12   :  { %19 = dma.hbm_to_vmem [thread:$0]  %s700_s0, 64, %s17_s10, [#allocation3]  }
  0x13   :  { %s588_s25 = scalar_lea.hbm %s701_s1, 64 }
  0x14   :  { %p589_p8 = scmp.ne.s32.totalorder %s701_s1, %s588_s25  ;;  %p592_p9 = scmp.lt.u32.totalorder %s588_s25, %s701_s1 }
  0x16   :  { %p594_p10 = pnand %p592_p9, %p589_p8 }
  0x18   :  { %597 = shalt.err (!%p594_p10)
}
  0x19   :  { %s598_s30 = scalar_lea.vmem %s27_s12, 64  ;;  %p603_p12 = scmp.lt.s32.totalorder %s27_s12, %s27_s12 }
  0x1a   :  { %p599_p11 = scmp.ne.s32.totalorder %s27_s12, %s598_s30  ;;  %p604_p13 = scmp.lt.s32.totalorder %s598_s30, %s598_s30 }
  0x1c   :  { %p605_p0 = por %p604_p13, %p603_p12 }
  0x1e   :  { %p606_p1 = pnand %p605_p0, %p599_p11 }
  0x20   :  { %609 = shalt.err (!%p606_p1)
}
  0x21   :  { %29 = dma.hbm_to_vmem [thread:$0]  %s701_s1, 64, %s27_s12, [#allocation6]  }
  0x22   :  { %632 = dma.done.wait [#allocation3], 64  }
  0x23   :  { %633 = vsyncadd [#allocation3], 4294967232 }
  0x24   :  { %634 = dma.done.wait [#allocation6], 64  }
  0x25   :  { %635 = vsyncadd [#allocation6], 4294967232  ;;  %v640_v0 = vmov 0.0   ;;  %vm641_vm0 = vmmov 0   ;;  %vm42_vm1 = vcmask 1043456   ;;  %vm38_vm2 = vcmask 31744  }
  0x26   :  { %537 = vmatprep.subr.mxu0 %v640_v0  ;;  %539 = vmatprep.mubr.msk.f32.mxu0 %vm641_vm0, %v640_v0  ;;  %v37_v1 = vld [vmem:[#allocation5] sm:$0xf]  ;;  %v36_v2 = vld [vmem:[#allocation2] sm:$0x7]  ;;  %s642_s1 = smov [#allocation7]   ;;  %vm492_vm3 = vcmask 256000  }
  0x27   :  { %522 = vmatprep.subr.mxu1 %v640_v0  ;;  %524 = vmatprep.mubr.msk.f32.mxu1 %vm641_vm0, %v640_v0  ;;  %v44_v3 = vsel %vm42_vm1, %v37_v1, 0  ;;  %v40_v4 = vsel %vm38_vm2, %v36_v2, 0  ;;  %s500_s4 = sshll.u32 %s642_s1, 4  ;;  %s501_s4 = int_to_ptr.vmem [resolvable:$true] %s500_s4 }
  0x28   :  { %v47_v5 = vand.u32 4294901760, %v44_v3  ;;  %v112_v6 = vand.u32 4294901760, %v40_v4  ;;  %s610_s5 = scalar_lea.vmem %s501_s4, 64  ;;  %p615_p3 = scmp.lt.s32.totalorder %s501_s4, %s501_s4 }
  0x29   :  { %p611_p2 = scmp.ne.s32.totalorder %s501_s4, %s610_s5  ;;  %p616_p4 = scmp.lt.s32.totalorder %s610_s5, %s610_s5 }
  0x2a   :  { %v124_v7 = vsub.f32 %v44_v3, %v47_v5  ;;  %538 = vmatpush3.msra.mxu0 %v47_v5  ;;  %v113_v8 = vsub.f32 %v40_v4, %v112_v6  ;;  %523 = vmatpush3.msra.mxu1 %v47_v5 }
  0x2b   :  { %527 = vmatprep.subr.mxu1 %v640_v0  ;;  %542 = vmatprep.subr.mxu0 %v640_v0  ;;  %p617_p5 = por %p616_p4, %p615_p3 }
  0x2c   :  { %v114_v9 = vand.u32 4294901760, %v113_v8  ;;  %v125_v10 = vand.u32 4294901760, %v124_v7 }
  0x2d   :  { %p618_p6 = pnand %p617_p5, %p611_p2 }
  0x2e   :  { %540 = vmatmul.mubr.f32.vlgmr.msra.gmra.mrb[0].mxu0 %v114_v9  ;;  %v115_v11 = vsub.f32 %v113_v8, %v114_v9  ;;  %v126_v12 = vsub.f32 %v124_v7, %v125_v10 }
  0x2f   :  { %543 = vmatpush3.msra.mxu0 %v125_v10  ;;  %544 = vmatprep.mubr.msk.f32.mxu0 %vm641_vm0, %v640_v0 }
  0x30   :  { %v116_v13 = vand.u32 4294901760, %v115_v11  ;;  %v127_v14 = vand.u32 4294901760, %v126_v12  ;;  %547 = vmatprep.subr.mxu0 %v640_v0 }
  0x32   :  { %525 = vmatmul.mubr.f32.vlgmr.msra.gmra.mrb[0].mxu1 %v116_v13 }
  0x33   :  { %528 = vmatpush3.msra.mxu1 %v127_v14  ;;  %529 = vmatprep.mubr.msk.f32.mxu1 %vm641_vm0, %v640_v0 }
  0x34   :  { %532 = vmatprep.subr.mxu1 %v640_v0 }
  0x36   :  { %545 = vmatmul.mubr.f32.vlgmr.msra.gmra.mrb[0].mxu0 %v112_v6 }
  0x37   :  { %548 = vmatpush3.msra.mxu0 %v47_v5  ;;  %549 = vmatprep.mubr.msk.f32.mxu0 %vm641_vm0, %v640_v0 }
  0x3a   :  { %530 = vmatmul.mubr.f32.vlgmr.msra.gmra.mrb[0].mxu1 %v112_v6 }
  0x3b   :  { %533 = vmatpush3.msra.mxu1 %v124_v7  ;;  %534 = vmatprep.mubr.msk.f32.mxu1 %vm641_vm0, %v640_v0 }
  0x3e   :  { %550 = vmatmul.mubr.f32.vlgmr.msra.gmra.mrb[0].mxu0 %v112_v6 }
  0x42   :  { %535 = vmatmul.mubr.f32.vlgmr.msra.gmra.mrb[0].mxu1 %v113_v8 }
 0x111   :  { %v488_v15 = vpop.f32.mrb[0].mxu0 }
 0x112   :  { %v551_v16 = vpop.f32.mrb[1].mxu0 }
 0x115   :  { %v268_v17 = vpop.f32.mrb[0].mxu1 }
 0x116   :  { %v552_v18 = vadd.f32 %v488_v15, %v268_v17  ;;  %v536_v19 = vpop.f32.mrb[1].mxu1 }
 0x118   :  { %493 = vst.msk [vmem:[#allocation7] sm:$0x7] %vm492_vm3, %v552_v18 }
 0x119   :  { %621 = shalt.err (!%p618_p6)
}
 0x11a   :  { %s622_s8 = scalar_lea.hbm %s702_s2, 64 }
 0x11b   :  { %p623_p7 = scmp.ne.s32.totalorder %s702_s2, %s622_s8  ;;  %p626_p8 = scmp.lt.u32.totalorder %s622_s8, %s702_s2 }
 0x11d   :  { %p628_p9 = pnand %p626_p8, %p623_p7 }
 0x11f   :  { %631 = shalt.err (!%p628_p9)
}
 0x120   :  { %503 = dma.vmem_to_hbm [thread:$0]  %s501_s4, 64, %s702_s2, [#allocation4]  }
 0x121   :  { %636 = dma.done.wait [#allocation4], 64  }
 0x122   :  { %637 = vsyncadd [#allocation4], 4294967232 }
 0x123   :  { %507 = vsyncpa [#allocation3], 1 }
 0x124   :  { %508 = vsyncpa [#allocation6], 1 }
 0x125   :  { %509 = vsyncpa [#allocation4], 1 }

</bundles_post_ra>
